<compile_context>
chip_gen: v6e
topology: v6e:2x2x1
jax: 0.10.0
libtpu: 0.0.40
codegen_flags: <defaults>
</compile_context>

<pallas_src>
import functools

import jax
import jax.numpy as jnp
from jax.experimental import pallas as pl
from jax.experimental.pallas import tpu as pltpu

NEG_SLOPE = 0.2
LANE = 128
DOT_PRECISION = jax.lax.Precision.HIGHEST

SINGLE_BLOCK_MAX = 512   # <= this many rows: one whole-array VMEM block, no grid
MIN_ROW_TILE = 256       # >= 256 rows amortizes the ~0.35us/step grid overhead
MAX_ROW_TILE = 2048      # ~2 MiB double-buffered tiles; safe on v5e/v6e/v7x VMEM


def _round_up(n, m):
    return ((n + m - 1) // m) * m


def linear_leakyrelu_kernel(x_ref, w_ref, b_ref, o_ref):
    # x: (rows, IN)  w: (IN, OUT_pad)  b: (1, OUT_pad)  o: (rows, OUT)
    # MXU matmul (unaligned K=5 is masked by Mosaic), bias add + LeakyReLU on the
    # VPU, then store only the first OUT (=10) lanes so padded cols never hit HBM.
    y = jnp.dot(x_ref[...], w_ref[...],
                preferred_element_type=jnp.float32,
                precision=DOT_PRECISION)
    y = y + b_ref[...]                      # (1, OUT_pad) broadcasts over rows
    y = jnp.where(y > 0, y, y * NEG_SLOPE)
    o_ref[...] = y[:, : o_ref.shape[-1]].astype(o_ref.dtype)


def prepare_params(weight, bias):
    """One-time parameter prep (init-time, NOT in the per-call hot path):
    torch-layout weight (OUT, IN) -> transposed (IN, OUT_pad) with the OUT dim
    zero-padded to a lane multiple (128) so the MXU result tile is lane-aligned.
    The contraction dim is left at IN (=5): Mosaic handles unaligned K."""
    out_f, in_f = weight.shape
    out_pad = _round_up(out_f, LANE)
    w_p = jnp.zeros((in_f, out_pad), jnp.float32).at[:, :out_f].set(weight.T)
    b_p = jnp.zeros((1, out_pad), jnp.float32).at[0, :out_f].set(bias)
    return w_p, b_p


def _choose_row_tile(batch):
    # Keep >= ~4 grid steps (so v7x can shard the parallel axis over both TCs)
    # while growing tiles toward the ~0.5-1 MiB sweet spot for HBM efficiency.
    t = _round_up(-(-batch // 4), MIN_ROW_TILE)
    return max(MIN_ROW_TILE, min(MAX_ROW_TILE, t))


@functools.partial(jax.jit, static_argnames=("out_features",))
def linear_leakyrelu(x, w_p, b_p, out_features):
    """x: (B, IN) f32; w_p: (IN, OUT_pad) f32; b_p: (1, OUT_pad) f32 -> (B, OUT) f32."""
    B, in_f = x.shape
    _, out_pad = w_p.shape
    out_shape = jax.ShapeDtypeStruct((B, out_features), jnp.float32)

    if B <= SINGLE_BLOCK_MAX:
        # Small batch: single invocation, whole arrays as VMEM blocks, no grid,
        # no padding, no post-slice.
        return pl.pallas_call(
            linear_leakyrelu_kernel,
            out_shape=out_shape,
            in_specs=[
                pl.BlockSpec(memory_space=pltpu.MemorySpace.VMEM),
                pl.BlockSpec(memory_space=pltpu.MemorySpace.VMEM),
                pl.BlockSpec(memory_space=pltpu.MemorySpace.VMEM),
            ],
            out_specs=pl.BlockSpec(memory_space=pltpu.MemorySpace.VMEM),
        )(x, w_p, b_p)

    # Large batch: stream row tiles over a parallel grid axis; W/bias blocks are
    # constant across the grid so they stay VMEM-resident.  grid = cdiv(B, tile):
    # the partial last block's OOB output rows are dropped by Pallas, so neither
    # x nor the output is ever padded/sliced in HBM.
    row_tile = _choose_row_tile(B)
    return pl.pallas_call(
        linear_leakyrelu_kernel,
        out_shape=out_shape,
        grid=(pl.cdiv(B, row_tile),),
        in_specs=[
            pl.BlockSpec((row_tile, in_f), lambda i: (i, 0)),
            pl.BlockSpec((in_f, out_pad), lambda i: (0, 0)),
            pl.BlockSpec((1, out_pad), lambda i: (0, 0)),
        ],
        out_specs=pl.BlockSpec((row_tile, out_features), lambda i: (i, 0)),
        compiler_params=pltpu.CompilerParams(
            dimension_semantics=("parallel",),   # v7x: shard row tiles across TCs
            vmem_limit_bytes=32 * 1024 * 1024,   # safe on v5e (16 MiB default) .. v7x
        ),
    )(x, w_p, b_p)


def reference(x, weight, bias):
    y = jnp.dot(x, weight.T, precision=DOT_PRECISION) + bias
    return jnp.where(y > 0, y, y * NEG_SLOPE)


if __name__ == "__main__":
    key = jax.random.PRNGKey(0)
    kx, kw, kb, kx2 = jax.random.split(key, 4)

    B, IN, OUT = 1, 5, 10

    # Deterministic parameter init (mimics torch.nn.Linear uniform(-1/sqrt(IN), 1/sqrt(IN)))
    bound = 1.0 / (IN ** 0.5)
    weight = jax.random.uniform(kw, (OUT, IN), jnp.float32, -bound, bound)
    bias = jax.random.uniform(kb, (OUT,), jnp.float32, -bound, bound)

    # One-time parameter prep (transpose + lane padding) -- out of the per-call hot path.
    w_p, b_p = prepare_params(weight, bias)

    # x1 ~ randn(1, 5), matching the torch module's input.
    x1 = jax.random.normal(kx, (B, IN), jnp.float32)

    out = jax.block_until_ready(linear_leakyrelu(x1, w_p, b_p, OUT))
    ref = reference(x1, weight, bias)
    assert out.shape == (B, OUT)
    assert jnp.allclose(out, ref, atol=1e-5, rtol=1e-5), (out, ref)

    # Also exercise the batched (grid-tiled, parallel-axis, ragged-last-block) path.
    xb = jax.random.normal(kx2, (1000, IN), jnp.float32)
    outb = jax.block_until_ready(linear_leakyrelu(xb, w_p, b_p, OUT))
    refb = reference(xb, weight, bias)
    assert outb.shape == (1000, OUT)
    assert jnp.allclose(outb, refb, atol=1e-4, rtol=1e-4)

    print("KERNEL_OK")
</pallas_src>

<mosaic_0001>
module attributes {stable_mosaic.version = 11 : i64} {
  func.func @linear_leakyrelu_kernel(%arg0: memref<1x5xf32, #tpu.memory_space<vmem>>, %arg1: memref<5x128xf32, #tpu.memory_space<vmem>>, %arg2: memref<1x128xf32, #tpu.memory_space<vmem>>, %arg3: memref<1x10xf32, #tpu.memory_space<vmem>>) attributes {dimension_semantics = [], scalar_prefetch = 0 : i64, scratch_operands = 0 : i64, tpu.core_type = #tpu.core_type<tc>} {
    %c0 = arith.constant 0 : index
    %c0_0 = arith.constant 0 : index
    %0 = vector.load %arg0[%c0, %c0_0] : memref<1x5xf32, #tpu.memory_space<vmem>>, vector<1x5xf32>
    %c0_1 = arith.constant 0 : index
    %c0_2 = arith.constant 0 : index
    %1 = vector.load %arg1[%c0_1, %c0_2] : memref<5x128xf32, #tpu.memory_space<vmem>>, vector<5x128xf32>
    %cst = arith.constant dense<0.000000e+00> : vector<1x128xf32>
    %2 = tpu.matmul %0, %1, %cst {dimension_numbers = #tpu.dot_dimension_numbers<[1], [0], [0], [1], [0, 0, 1, 1], [], []>, precision = #tpu.contract_precision<fp32>} : vector<1x5xf32>, vector<5x128xf32>, vector<1x128xf32> -> vector<1x128xf32>
    %c0_3 = arith.constant 0 : index
    %c0_4 = arith.constant 0 : index
    %3 = vector.load %arg2[%c0_3, %c0_4] : memref<1x128xf32, #tpu.memory_space<vmem>>, vector<1x128xf32>
    %4 = arith.addf %2, %3 : vector<1x128xf32>
    %cst_5 = arith.constant 0.000000e+00 : f32
    %5 = vector.broadcast %cst_5 : f32 to vector<1x128xf32>
    %6 = arith.cmpf ogt, %4, %5 : vector<1x128xf32>
    %cst_6 = arith.constant 2.000000e-01 : f32
    %7 = vector.broadcast %cst_6 : f32 to vector<1x128xf32>
    %8 = arith.mulf %4, %7 : vector<1x128xf32>
    %9 = arith.select %6, %4, %8 : vector<1x128xi1>, vector<1x128xf32>
    %10 = vector.extract_strided_slice %9 {offsets = [0, 0], sizes = [1, 10], strides = [1, 1]} : vector<1x128xf32> to vector<1x10xf32>
    %c0_7 = arith.constant 0 : index
    %c0_8 = arith.constant 0 : index
    %11 = vector.load %arg3[%c0_7, %c0_8] : memref<1x10xf32, #tpu.memory_space<vmem>>, vector<1x10xf32>
    tpu.vector_store %arg3[%c0_7, %c0_8], %10 {strides = array<i32>} : memref<1x10xf32, #tpu.memory_space<vmem>>, vector<1x10xf32>,
    return
  }
}

</mosaic_0001>

<bundles_post_ra>
// kernel: linear_leakyrelu.1
= control target key start
LH: loop header
LB: loop body
LE: loop exit
PB: predicated region body
PF: predicated region fallthrough
CT: control target
= control target key end

     0   :  { %8 = vsyncpa [#allocation3], 0  ;;  %s673_s0 = inlined_call_operand.hbm [shape: f32[1,5], index: 0, kind: input, shape index: {}]   ;;  %s674_s1 = inlined_call_operand.hbm [shape: f32[5,128], index: 1, kind: input, shape index: {}]   ;;  %s675_s2 = inlined_call_operand.vmem [shape: f32[1,128], index: 2, kind: input, shape index: {}]   ;;  %s676_s3 = inlined_call_operand.hbm [shape: f32[1,10], index: 3, kind: output, shape index: {}]  }
   0x1   :  { %9 = vsyncpa [#allocation6], 0 }
   0x2   :  { %10 = vsyncpa [#allocation4], 0  ;;  %s630_s12 = smov [#allocation2]   ;;  %s631_s14 = smov [#allocation5]  }
   0x3   :  { %s17_s13 = sshll.u32 %s630_s12, 4  ;;  %s27_s15 = sshll.u32 %s631_s14, 4  ;;  %s18_s13 = int_to_ptr.vmem [resolvable:$true] %s17_s13  ;;  %s28_s15 = int_to_ptr.vmem [resolvable:$true] %s27_s15 }
   0x4   :  { %s572_s16 = scalar_lea.vmem %s18_s13, 16  ;;  %s576_s17 = scalar_lea.vmem %s18_s13, 32 }
   0x5   :  { %p573_p0 = scmp.ne.s32.totalorder %s18_s13, %s572_s16  ;;  %p577_p1 = scmp.lt.s32.totalorder %s18_s13, %s18_s13 }
   0x6   :  { %p578_p2 = scmp.lt.s32.totalorder %s576_s17, %s572_s16 }
   0x8   :  { %p579_p3 = por %p578_p2, %p577_p1 }
   0xa   :  { %p580_p4 = pnand %p579_p3, %p573_p0 }
   0xc   :  { %583 = shalt.err (!%p580_p4)
}
   0xd   :  { %20 = dma.hbm_to_vmem [thread:$0]  %s673_s0, 16, %s18_s13, [#allocation3]  }
   0xe   :  { %s592_s20 = scalar_lea.vmem %s28_s15, 128  ;;  %p597_p6 = scmp.lt.s32.totalorder %s28_s15, %s28_s15 }
   0xf   :  { %p593_p5 = scmp.ne.s32.totalorder %s28_s15, %s592_s20  ;;  %p598_p7 = scmp.lt.s32.totalorder %s592_s20, %s592_s20 }
  0x11   :  { %p599_p8 = por %p598_p7, %p597_p6 }
  0x13   :  { %p600_p9 = pnand %p599_p8, %p593_p5 }
  0x15   :  { %603 = shalt.err (!%p600_p9)
}
  0x16   :  { %30 = dma.hbm_to_vmem [thread:$0]  %s674_s1, 128, %s28_s15, [#allocation6]  }
  0x17   :  { %624 = dma.done.wait [#allocation3], 16  }
  0x18   :  { %625 = vsyncadd [#allocation3], 4294967280 }
  0x19   :  { %626 = dma.done.wait [#allocation6], 128  }
  0x1a   :  { %627 = vsyncadd [#allocation6], 4294967168  ;;  %v632_v0 = vmov 0.0   ;;  %vm633_vm0 = vmmov 0   ;;  %vm46_vm1 = vcmask 1044480   ;;  %vm42_vm2 = vcmask 39936  }
  0x1b   :  { %529 = vmatprep.subr.mxu0 %v632_v0  ;;  %531 = vmatprep.mubr.msk.f32.mxu0 %vm633_vm0, %v632_v0  ;;  %v40_v1 = vld [vmem:[#allocation5] sm:$0x1f]  ;;  %v39_v2 = vld [vmem:[#allocation2] sm:$0x1]  ;;  %s634_s23 = smov [#allocation7]   ;;  %vm499_vm4 = vcmask 73728  }
  0x1c   :  { %534 = vmatprep.subr.mxu1 %v632_v0  ;;  %536 = vmatprep.mubr.msk.f32.mxu1 %vm633_vm0, %v632_v0  ;;  %v48_v3 = vsel %vm46_vm1, %v40_v1, 0  ;;  %v44_v4 = vsel %vm42_vm2, %v39_v2, 0  ;;  %v41_v15 = vld [vmem:[%s675_s2] sm:$0x1]  ;;  %s507_s2 = sshll.u32 %s634_s23, 4  ;;  %s508_s2 = int_to_ptr.vmem [resolvable:$true] %s507_s2 }
  0x1d   :  { %v81_v5 = vand.u32 4294901760, %v48_v3  ;;  %v116_v6 = vand.u32 4294901760, %v44_v4  ;;  %s604_s24 = scalar_lea.vmem %s508_s2, 16  ;;  %s608_s25 = scalar_lea.vmem %s508_s2, 32 }
  0x1e   :  { %p605_p10 = scmp.ne.s32.totalorder %s508_s2, %s604_s24  ;;  %p609_p11 = scmp.lt.s32.totalorder %s508_s2, %s508_s2 }
  0x1f   :  { %530 = vmatpush3.msra.mxu0 %v81_v5  ;;  %v117_v7 = vsub.f32 %v44_v4, %v116_v6  ;;  %v158_v8 = vsub.f32 %v48_v3, %v81_v5  ;;  %p610_p12 = scmp.lt.s32.totalorder %s608_s25, %s604_s24 }
  0x20   :  { %539 = vmatprep.subr.mxu0 %v632_v0 }
  0x21   :  { %v118_v9 = vand.u32 4294901760, %v117_v7  ;;  %v159_v10 = vand.u32 4294901760, %v158_v8  ;;  %p611_p13 = por %p610_p12, %p609_p11 }
  0x23   :  { %v119_v11 = vsub.f32 %v117_v7, %v118_v9  ;;  %v160_v12 = vsub.f32 %v158_v8, %v159_v10  ;;  %p612_p0 = pnand %p611_p13, %p605_p10 }
  0x25   :  { %v120_v13 = vand.u32 4294901760, %v119_v11  ;;  %v161_v14 = vand.u32 4294901760, %v160_v12 }
  0x27   :  { %532 = vmatmul.mubr.f32.vlgmr.msra.gmra.mxu0 %v120_v13  ;;  %535 = vmatpush3.msra.mxu1 %v161_v14 }
  0x28   :  { %540 = vmatpush3.msra.mxu0 %v158_v8  ;;  %537 = vmatmul.mubr.f32.vlgmr.msra.gmra.mxu1 %v116_v6 }
  0x29   :  { %544 = vmatprep.subr.mxu1 %v632_v0  ;;  %541 = vmatprep.mubr.msk.f32.mxu0 %vm633_vm0, %v632_v0 }
  0x2a   :  { %545 = vmatpush3.msra.mxu1 %v81_v5  ;;  %549 = vmatprep.subr.mxu0 %v632_v0 }
  0x2b   :  { %542 = vmatmul.mubr.f32.vlgmr.msra.gmra.mxu0 %v117_v7  ;;  %546 = vmatprep.mubr.msk.f32.mxu1 %vm633_vm0, %v632_v0 }
  0x2c   :  { %550 = vmatpush3.msra.mxu0 %v159_v10  ;;  %547 = vmatmul.mubr.f32.vlgmr.msra.gmra.mxu1 %v118_v9 }
  0x2d   :  { %554 = vmatprep.subr.mxu1 %v632_v0  ;;  %551 = vmatprep.mubr.msk.f32.mxu0 %vm633_vm0, %v632_v0 }
  0x2e   :  { %555 = vmatpush3.msra.mxu1 %v81_v5  ;;  %556 = vmatprep.mubr.msk.f32.mxu1 %vm633_vm0, %v632_v0 }
  0x2f   :  { %552 = vmatmul.mubr.f32.vlgmr.msra.gmra.mxu0 %v116_v6 }
  0x30   :  { %557 = vmatmul.mubr.f32.vlgmr.msra.gmra.mxu1 %v116_v6 }
  0xe7   :  { %v122_v16 = vpop.f32.mrf.mxu0 }
  0xe8   :  { %v123_v17 = vadd.f32 %v122_v16, %v41_v15  ;;  %v198_v18 = vpop.f32.mrf.mxu1 }
  0xe9   :  { %v533_v19 = vpop.f32.mrf.mxu0 }
  0xea   :  { %v199_v20 = vadd.f32 %v198_v18, %v123_v17  ;;  %v538_v21 = vpop.f32.mrf.mxu1 }
  0xeb   :  { %v272_v22 = vpop.f32.mrf.mxu0 }
  0xec   :  { %v273_v23 = vadd.f32 %v272_v22, %v199_v20  ;;  %v346_v24 = vpop.f32.mrf.mxu1 }
  0xed   :  { %v543_v25 = vpop.f32.mrf.mxu0 }
  0xee   :  { %v347_v26 = vadd.f32 %v346_v24, %v273_v23  ;;  %v548_v27 = vpop.f32.mrf.mxu1 }
  0xef   :  { %v420_v28 = vpop.f32.mrf.mxu0 }
  0xf0   :  { %v421_v29 = vadd.f32 %v420_v28, %v347_v26  ;;  %v492_v30 = vpop.f32.mrf.mxu1 }
  0xf1   :  { %v553_v31 = vpop.f32.mrf.mxu0 }
  0xf2   :  { %v493_v32 = vadd.f32 %v492_v30, %v421_v29  ;;  %v558_v33 = vpop.f32.mrf.mxu1 }
  0xf4   :  { %vm496_vm3 = vcmp.gt.f32.partialorder %v493_v32, 0.0  ;;  %v497_v34 = vmul.f32 0.2, %v493_v32 }
  0xf6   :  { %v498_v35 = vsel %vm496_vm3, %v493_v32, %v497_v34 }
  0xf7   :  { %500 = vst.msk [vmem:[#allocation7] sm:$0x1] %vm499_vm4, %v498_v35 }
  0xf8   :  { %615 = shalt.err (!%p612_p0)
}
  0xf9   :  { %510 = dma.vmem_to_hbm [thread:$0]  %s508_s2, 16, %s676_s3, [#allocation4]  }
  0xfa   :  { %628 = dma.done.wait [#allocation4], 16  }
  0xfb   :  { %629 = vsyncadd [#allocation4], 4294967280 }
  0xfc   :  { %514 = vsyncpa [#allocation3], 1 }
  0xfd   :  { %515 = vsyncpa [#allocation6], 1 }
  0xfe   :  { %516 = vsyncpa [#allocation4], 1 }

</bundles_post_ra>
